<compile_context>
chip_gen: v7x
topology: tpu7x:2x2x1
jax: 0.10.0
libtpu: 0.0.40
codegen_flags: <defaults>
</compile_context>

<pallas_src>
import jax
import jax.numpy as jnp
from jax import lax
from jax.experimental import pallas as pl
from jax.experimental.pallas import tpu as pltpu


# ----------------------------------------------------------------------------
# Pallas kernels
# ----------------------------------------------------------------------------

def _conv_pool_kernel(p_ref, w_ref, b_ref, o_ref):
    """Fused conv-as-GEMM + bias + ReLU + 2x2 maxpool, single MXU dot.

    p_ref: [K, 4*tm] bf16  im2col patches, window-major column blocks of tm
    w_ref: [N, K]    bf16  conv weights (Cout x Cin*Kh*Kw)
    b_ref: [N, 1]    f32   bias
    o_ref: [N, tm]   bf16  pooled, ReLU'd activations (channel-major)
    """
    tm = o_ref.shape[-1]
    acc = jnp.dot(w_ref[...], p_ref[...],
                  preferred_element_type=jnp.float32)          # [N, 4*tm]
    # 2x2 maxpool = max over the four lane-aligned tm-wide window slices (VPU).
    r = jnp.maximum(jnp.maximum(acc[:, 0 * tm:1 * tm], acc[:, 1 * tm:2 * tm]),
                    jnp.maximum(acc[:, 2 * tm:3 * tm], acc[:, 3 * tm:4 * tm]))
    # relu(max_w(conv) + b) == maxpool(relu(conv + b)): bias is window-invariant
    # and relu/max commute, so this epilogue is exact.
    o_ref[...] = jnp.maximum(r + b_ref[...], 0.0).astype(o_ref.dtype)


def _fc_stack_kernel(x_ref, w1_ref, b1_ref, w2_ref, b2_ref, w3_ref, b3_ref,
                     o_ref):
    """fc1+ReLU -> fc2+ReLU -> fc3+softmax; intermediates stay f32 in vregs."""
    h = jnp.dot(x_ref[...], w1_ref[...],
                preferred_element_type=jnp.float32) + b1_ref[...]
    h = jnp.maximum(h, 0.0)
    h = jnp.dot(h, w2_ref[...],
                preferred_element_type=jnp.float32) + b2_ref[...]
    h = jnp.maximum(h, 0.0)
    z = jnp.dot(h, w3_ref[...],
                preferred_element_type=jnp.float32) + b3_ref[...]
    z = z - jnp.max(z, axis=-1, keepdims=True)
    e = jnp.exp(z)
    inv = pl.reciprocal(jnp.sum(e, axis=-1, keepdims=True), approx=False)
    o_ref[...] = e * inv


# ----------------------------------------------------------------------------
# Tile pickers: cdiv/pad grids, >=2 steps for v7x megacore, VMEM-safe caps
# ----------------------------------------------------------------------------

def _round_up(x, m):
    return ((x + m - 1) // m) * m


def _pick_lane_tile(m, cap=1024):
    """Lane-axis (last dim) tile: multiple of 128; cap keeps VMEM tiny."""
    if m < 256:
        return _round_up(m, 128)
    return min(cap, _round_up((m + 1) // 2, 128))   # >=2 grid steps (v7x 2 TCs)


def _pick_row_tile(b, cap=512):
    """Sublane-axis (row) tile: multiple of 8."""
    if b < 256:
        return _round_up(b, 8)
    return min(cap, _round_up((b + 1) // 2, 8))


# ----------------------------------------------------------------------------
# Plain-JAX glue: im2col with pool-window grouping (channel-major, no transposes
# needed between kernels) and per-block window-major packing.
# ----------------------------------------------------------------------------

def _im2col_pool(h, k):
    """h: [C, B, H, W] -> p: [4, C*k*k, B*ph*pw] grouped by 2x2 pool window.

    p[wi*2+wj, (c*k + di)*k + dj, (b*ph + pi)*pw + pj]
        = h[c, b, 2*pi + wi + di, 2*pj + wj + dj]
    K order is (c, di, dj), matching a plain reshape of the OIHW conv weight.
    """
    C, B, H, W = h.shape
    oh, ow = H - k + 1, W - k + 1
    ph, pw = oh // 2, ow // 2
    cols = jnp.stack([h[:, :, i:i + oh, j:j + ow]
                      for i in range(k) for j in range(k)], axis=1)
    cols = cols[:, :, :, :2 * ph, :2 * pw]                 # [C, kk, B, 2ph, 2pw]
    cols = cols.reshape(C, k * k, B, ph, 2, pw, 2)         # ..., ph, wi, pw, wj
    cols = cols.transpose(4, 6, 0, 1, 2, 3, 5)             # [wi, wj, C, kk, B, ph, pw]
    return cols.reshape(4, C * k * k, B * ph * pw), (B, ph, pw)


def _pack_patches(p4, tm):
    """[4, K, M] -> [K, g*4*tm] with per-block window-major column order."""
    _, K, M = p4.shape
    g = -(-M // tm)
    p4 = jnp.pad(p4, ((0, 0), (0, 0), (0, g * tm - M)))
    p4 = p4.reshape(4, K, g, tm).transpose(1, 2, 0, 3)     # [K, g, 4, tm]
    return p4.reshape(K, g * 4 * tm), g


# ----------------------------------------------------------------------------
# pallas_call wrappers
# ----------------------------------------------------------------------------

def conv_pool_pallas(h, w, b, k):
    """h: [Cin, B, H, W] bf16, w: [Cout, Cin*k*k] bf16, b: [Cout] f32
    -> channel-major pooled activations [Cout, B, H', W'] bf16."""
    p4, (B, ph, pw) = _im2col_pool(h, k)
    _, K, M = p4.shape
    N = w.shape[0]
    tm = _pick_lane_tile(M)
    p, g = _pack_patches(p4, tm)
    out = pl.pallas_call(
        _conv_pool_kernel,
        out_shape=jax.ShapeDtypeStruct((N, g * tm), jnp.bfloat16),
        grid=(g,),
        in_specs=[
            pl.BlockSpec((K, 4 * tm), lambda i: (0, i)),
            pl.BlockSpec((N, K), lambda i: (0, 0)),
            pl.BlockSpec((N, 1), lambda i: (0, 0)),
        ],
        out_specs=pl.BlockSpec((N, tm), lambda i: (0, i)),
        compiler_params=pltpu.CompilerParams(
            dimension_semantics=("parallel",)),
    )(p, w, b.reshape(N, 1))
    return out[:, :M].reshape(N, B, ph, pw)


def fc_stack_pallas(x, prep):
    """x: [B, 192] bf16 -> softmax probabilities [B, 10] f32 (one fused call)."""
    B, K = x.shape
    w1, w2, w3 = prep["fc1_w"], prep["fc2_w"], prep["fc3_w"]
    b1, b2, b3 = prep["fc1_b"], prep["fc2_b"], prep["fc3_b"]
    n1, n2, n3 = w1.shape[1], w2.shape[1], w3.shape[1]
    tb = _pick_row_tile(B)
    gb = -(-B // tb)
    xp = jnp.pad(x, ((0, gb * tb - B), (0, 0)))
    out = pl.pallas_call(
        _fc_stack_kernel,
        out_shape=jax.ShapeDtypeStruct((gb * tb, n3), jnp.float32),
        grid=(gb,),
        in_specs=[
            pl.BlockSpec((tb, K), lambda i: (i, 0)),
            pl.BlockSpec((K, n1), lambda i: (0, 0)),
            pl.BlockSpec((1, n1), lambda i: (0, 0)),
            pl.BlockSpec((n1, n2), lambda i: (0, 0)),
            pl.BlockSpec((1, n2), lambda i: (0, 0)),
            pl.BlockSpec((n2, n3), lambda i: (0, 0)),
            pl.BlockSpec((1, n3), lambda i: (0, 0)),
        ],
        out_specs=pl.BlockSpec((tb, n3), lambda i: (i, 0)),
        compiler_params=pltpu.CompilerParams(
            dimension_semantics=("parallel",)),
    )(xp, w1, b1, w2, b2, w3, b3)
    return out[:B]


# ----------------------------------------------------------------------------
# One-time parameter preparation (casts / reshapes done OUTSIDE the forward)
# ----------------------------------------------------------------------------

def prepare_params(params):
    return {
        # conv weights: OIHW reshaped to [Cout, Cin*Kh*Kw] (matches im2col K order)
        "w1": params["w1"].reshape(params["w1"].shape[0], -1).astype(jnp.bfloat16),
        "b1": params["b1"].astype(jnp.float32),
        "w2": params["w2"].reshape(params["w2"].shape[0], -1).astype(jnp.bfloat16),
        "b2": params["b2"].astype(jnp.float32),
        "fc1_w": params["fc1_w"].astype(jnp.bfloat16),     # bf16 x bf16 MXU dot
        "fc1_b": params["fc1_b"].reshape(1, -1).astype(jnp.float32),
        "fc2_w": params["fc2_w"].astype(jnp.float32),      # f32 through fc2/fc3
        "fc2_b": params["fc2_b"].reshape(1, -1).astype(jnp.float32),
        "fc3_w": params["fc3_w"].astype(jnp.float32),
        "fc3_b": params["fc3_b"].reshape(1, -1).astype(jnp.float32),
    }


# ----------------------------------------------------------------------------
# Full forward pass (3 pallas_calls total, no XLA transposes between convs)
# ----------------------------------------------------------------------------

def net_forward(x_nchw, prep):
    B = x_nchw.shape[0]
    # cast the RAW input (not the 25x-expanded patches) and go channel-major.
    x = jnp.transpose(x_nchw.astype(jnp.bfloat16), (1, 0, 2, 3))  # [1, B, 28, 28]

    h1 = conv_pool_pallas(x, prep["w1"], prep["b1"], 5)           # [4, B, 12, 12] bf16
    h2 = conv_pool_pallas(h1, prep["w2"], prep["b2"], 5)          # [12, B, 4, 4] bf16

    # PyTorch flatten order is (C, H, W) per example -> [B, 192]  (tiny pass)
    feat = jnp.transpose(h2, (1, 0, 2, 3)).reshape(B, -1)

    return fc_stack_pallas(feat, prep)                            # [B, 10] f32


# ----------------------------------------------------------------------------
# Independent pure-JAX reference (XLA convs/pools, f32) for correctness check
# ----------------------------------------------------------------------------

def net_forward_ref(x_nchw, params):
    dn = ("NCHW", "OIHW", "NCHW")
    y = lax.conv_general_dilated(x_nchw, params["w1"], (1, 1), "VALID",
                                 dimension_numbers=dn)
    y = jnp.maximum(y + params["b1"][None, :, None, None], 0.0)
    y = lax.reduce_window(y, -jnp.inf, lax.max, (1, 1, 2, 2), (1, 1, 2, 2),
                          "VALID")
    y = lax.conv_general_dilated(y, params["w2"], (1, 1), "VALID",
                                 dimension_numbers=dn)
    y = jnp.maximum(y + params["b2"][None, :, None, None], 0.0)
    y = lax.reduce_window(y, -jnp.inf, lax.max, (1, 1, 2, 2), (1, 1, 2, 2),
                          "VALID")
    y = y.reshape(y.shape[0], -1)
    y = jnp.maximum(y @ params["fc1_w"] + params["fc1_b"], 0.0)
    y = jnp.maximum(y @ params["fc2_w"] + params["fc2_b"], 0.0)
    return jax.nn.softmax(y @ params["fc3_w"] + params["fc3_b"], axis=-1)


# ----------------------------------------------------------------------------
# Deterministic parameter init (PyTorch-default-like uniform(-1/sqrt(fan_in), .))
# ----------------------------------------------------------------------------

def init_params(key):
    def uni(k, shape, fan_in):
        bound = 1.0 / jnp.sqrt(float(fan_in))
        return jax.random.uniform(k, shape, jnp.float32, -bound, bound)

    ks = jax.random.split(key, 10)
    return {
        "w1": uni(ks[0], (4, 1, 5, 5), 1 * 5 * 5),     # conv1 [Cout,Cin,Kh,Kw]
        "b1": uni(ks[1], (4,), 1 * 5 * 5),
        "w2": uni(ks[2], (12, 4, 5, 5), 4 * 5 * 5),    # conv2
        "b2": uni(ks[3], (12,), 4 * 5 * 5),
        "fc1_w": uni(ks[4], (192, 120), 192),          # stored transposed: [K, N]
        "fc1_b": uni(ks[5], (120,), 192),
        "fc2_w": uni(ks[6], (120, 64), 120),
        "fc2_b": uni(ks[7], (64,), 120),
        "fc3_w": uni(ks[8], (64, 10), 64),
        "fc3_b": uni(ks[9], (10,), 64),
    }


if __name__ == "__main__":
    key = jax.random.PRNGKey(0)
    pkey, xkey = jax.random.split(key)
    params = init_params(pkey)
    prep = prepare_params(params)          # one-time weight cast/reshape

    # MNIST-shaped input (spatial 28 is required by fc1 = 12*4*4), batch = 2.
    x = jax.random.normal(xkey, (2, 1, 28, 28), dtype=jnp.float32)

    out = jax.block_until_ready(jax.jit(net_forward)(x, prep))
    ref = jax.block_until_ready(jax.jit(net_forward_ref)(x, params))

    assert out.shape == (2, 10), out.shape
    assert bool(jnp.all(jnp.isfinite(out)))
    # exact (non-approx) softmax reciprocal => rows sum to 1 at f32 accuracy
    assert bool(jnp.allclose(jnp.sum(out, axis=-1), 1.0, atol=1e-3))
    # bf16 MXU operands / bf16 activation storage (f32 accumulation) vs f32 ref
    assert bool(jnp.allclose(out, ref, atol=2e-2, rtol=0.0)), \
        float(jnp.max(jnp.abs(out - ref)))

    print("KERNEL_OK")
</pallas_src>

<mosaic_0001>
module attributes {stable_mosaic.version = 11 : i64} {
  func.func @_conv_pool_kernel(%arg0: i32, %arg1: memref<25x1024xbf16, #tpu.memory_space<vmem>>, %arg2: memref<4x25xbf16, #tpu.memory_space<vmem>>, %arg3: memref<4x1xf32, #tpu.memory_space<vmem>>, %arg4: memref<4x256xbf16, #tpu.memory_space<vmem>>) attributes {dimension_semantics = [#tpu.dimension_semantics<parallel>], iteration_bounds = array<i64: 2>, scalar_prefetch = 0 : i64, scratch_operands = 0 : i64, tpu.core_type = #tpu.core_type<tc>, window_params = [{transform_indices = @transform_0, window_bounds = array<i64: 25, 1024>}, {pipeline_mode = #tpu.pipeline_mode<synchronous>, transform_indices = @transform_1, window_bounds = array<i64: 4, 25>}, {pipeline_mode = #tpu.pipeline_mode<synchronous>, transform_indices = @transform_2, window_bounds = array<i64: 4, 1>}, {transform_indices = @transform_3, window_bounds = array<i64: 4, 256>}]} {
    %c0 = arith.constant 0 : index
    %c0_0 = arith.constant 0 : index
    %0 = vector.load %arg2[%c0, %c0_0] : memref<4x25xbf16, #tpu.memory_space<vmem>>, vector<4x25xbf16>
    %c0_1 = arith.constant 0 : index
    %c0_2 = arith.constant 0 : index
    %1 = vector.load %arg1[%c0_1, %c0_2] : memref<25x1024xbf16, #tpu.memory_space<vmem>>, vector<25x1024xbf16>
    %cst = arith.constant dense<0.000000e+00> : vector<4x1024xf32>
    %2 = tpu.matmul %0, %1, %cst {dimension_numbers = #tpu.dot_dimension_numbers<[1], [0], [0], [1], [0, 0, 1, 1], [], []>} : vector<4x25xbf16>, vector<25x1024xbf16>, vector<4x1024xf32> -> vector<4x1024xf32>
    %3 = vector.extract_strided_slice %2 {offsets = [0, 0], sizes = [4, 256], strides = [1, 1]} : vector<4x1024xf32> to vector<4x256xf32>
    %4 = vector.extract_strided_slice %2 {offsets = [0, 256], sizes = [4, 256], strides = [1, 1]} : vector<4x1024xf32> to vector<4x256xf32>
    %5 = arith.maximumf %3, %4 : vector<4x256xf32>
    %6 = vector.extract_strided_slice %2 {offsets = [0, 512], sizes = [4, 256], strides = [1, 1]} : vector<4x1024xf32> to vector<4x256xf32>
    %7 = vector.extract_strided_slice %2 {offsets = [0, 768], sizes = [4, 256], strides = [1, 1]} : vector<4x1024xf32> to vector<4x256xf32>
    %8 = arith.maximumf %6, %7 : vector<4x256xf32>
    %9 = arith.maximumf %5, %8 : vector<4x256xf32>
    %c0_3 = arith.constant 0 : index
    %c0_4 = arith.constant 0 : index
    %10 = vector.load %arg3[%c0_3, %c0_4] : memref<4x1xf32, #tpu.memory_space<vmem>>, vector<4x1xf32>
    %11 = vector.broadcast %10 : vector<4x1xf32> to vector<4x256xf32>
    %12 = arith.addf %9, %11 : vector<4x256xf32>
    %cst_5 = arith.constant 0.000000e+00 : f32
    %13 = vector.broadcast %cst_5 : f32 to vector<4x256xf32>
    %14 = arith.maximumf %12, %13 : vector<4x256xf32>
    %15 = arith.truncf %14 : vector<4x256xf32> to vector<4x256xbf16>
    %c0_6 = arith.constant 0 : index
    %c0_7 = arith.constant 0 : index
    %16 = vector.load %arg4[%c0_6, %c0_7] : memref<4x256xbf16, #tpu.memory_space<vmem>>, vector<4x256xbf16>
    tpu.vector_store %arg4[%c0_6, %c0_7], %15 {strides = array<i32>} : memref<4x256xbf16, #tpu.memory_space<vmem>>, vector<4x256xbf16>,
    return
  }
  func.func @transform_0(%arg0: i32) -> (i32, i32) {
    %c0_i32 = arith.constant 0 : i32
    %c0_i32_0 = arith.constant 0 : i32
    return %c0_i32, %arg0 : i32, i32
  }
  func.func @transform_1(%arg0: i32) -> (i32, i32) {
    %c0_i32 = arith.constant 0 : i32
    %c0_i32_0 = arith.constant 0 : i32
    %c0_i32_1 = arith.constant 0 : i32
    return %c0_i32, %c0_i32_0 : i32, i32
  }
  func.func @transform_2(%arg0: i32) -> (i32, i32) {
    %c0_i32 = arith.constant 0 : i32
    %c0_i32_0 = arith.constant 0 : i32
    %c0_i32_1 = arith.constant 0 : i32
    return %c0_i32, %c0_i32_0 : i32, i32
  }
  func.func @transform_3(%arg0: i32) -> (i32, i32) {
    %c0_i32 = arith.constant 0 : i32
    %c0_i32_0 = arith.constant 0 : i32
    return %c0_i32, %arg0 : i32, i32
  }
}

module attributes {stable_mosaic.version = 11 : i64} {
  func.func @_conv_pool_kernel(%arg0: i32, %arg1: memref<100x512xbf16, #tpu.memory_space<vmem>>, %arg2: memref<12x100xbf16, #tpu.memory_space<vmem>>, %arg3: memref<12x1xf32, #tpu.memory_space<vmem>>, %arg4: memref<12x128xbf16, #tpu.memory_space<vmem>>) attributes {dimension_semantics = [#tpu.dimension_semantics<parallel>], iteration_bounds = array<i64: 1>, scalar_prefetch = 0 : i64, scratch_operands = 0 : i64, tpu.core_type = #tpu.core_type<tc>, window_params = [{transform_indices = @transform_0, window_bounds = array<i64: 100, 512>}, {pipeline_mode = #tpu.pipeline_mode<synchronous>, transform_indices = @transform_1, window_bounds = array<i64: 12, 100>}, {pipeline_mode = #tpu.pipeline_mode<synchronous>, transform_indices = @transform_2, window_bounds = array<i64: 12, 1>}, {transform_indices = @transform_3, window_bounds = array<i64: 12, 128>}]} {
    %c0 = arith.constant 0 : index
    %c0_0 = arith.constant 0 : index
    %0 = vector.load %arg2[%c0, %c0_0] : memref<12x100xbf16, #tpu.memory_space<vmem>>, vector<12x100xbf16>
    %c0_1 = arith.constant 0 : index
    %c0_2 = arith.constant 0 : index
    %1 = vector.load %arg1[%c0_1, %c0_2] : memref<100x512xbf16, #tpu.memory_space<vmem>>, vector<100x512xbf16>
    %cst = arith.constant dense<0.000000e+00> : vector<12x512xf32>
    %2 = tpu.matmul %0, %1, %cst {dimension_numbers = #tpu.dot_dimension_numbers<[1], [0], [0], [1], [0, 0, 1, 1], [], []>} : vector<12x100xbf16>, vector<100x512xbf16>, vector<12x512xf32> -> vector<12x512xf32>
    %3 = vector.extract_strided_slice %2 {offsets = [0, 0], sizes = [12, 128], strides = [1, 1]} : vector<12x512xf32> to vector<12x128xf32>
    %4 = vector.extract_strided_slice %2 {offsets = [0, 128], sizes = [12, 128], strides = [1, 1]} : vector<12x512xf32> to vector<12x128xf32>
    %5 = arith.maximumf %3, %4 : vector<12x128xf32>
    %6 = vector.extract_strided_slice %2 {offsets = [0, 256], sizes = [12, 128], strides = [1, 1]} : vector<12x512xf32> to vector<12x128xf32>
    %7 = vector.extract_strided_slice %2 {offsets = [0, 384], sizes = [12, 128], strides = [1, 1]} : vector<12x512xf32> to vector<12x128xf32>
    %8 = arith.maximumf %6, %7 : vector<12x128xf32>
    %9 = arith.maximumf %5, %8 : vector<12x128xf32>
    %c0_3 = arith.constant 0 : index
    %c0_4 = arith.constant 0 : index
    %10 = vector.load %arg3[%c0_3, %c0_4] : memref<12x1xf32, #tpu.memory_space<vmem>>, vector<12x1xf32>
    %11 = vector.broadcast %10 : vector<12x1xf32> to vector<12x128xf32>
    %12 = arith.addf %9, %11 : vector<12x128xf32>
    %cst_5 = arith.constant 0.000000e+00 : f32
    %13 = vector.broadcast %cst_5 : f32 to vector<12x128xf32>
    %14 = arith.maximumf %12, %13 : vector<12x128xf32>
    %15 = arith.truncf %14 : vector<12x128xf32> to vector<12x128xbf16>
    %c0_6 = arith.constant 0 : index
    %c0_7 = arith.constant 0 : index
    %16 = vector.load %arg4[%c0_6, %c0_7] : memref<12x128xbf16, #tpu.memory_space<vmem>>, vector<12x128xbf16>
    tpu.vector_store %arg4[%c0_6, %c0_7], %15 {strides = array<i32>} : memref<12x128xbf16, #tpu.memory_space<vmem>>, vector<12x128xbf16>,
    return
  }
  func.func @transform_0(%arg0: i32) -> (i32, i32) {
    %c0_i32 = arith.constant 0 : i32
    %c0_i32_0 = arith.constant 0 : i32
    return %c0_i32, %arg0 : i32, i32
  }
  func.func @transform_1(%arg0: i32) -> (i32, i32) {
    %c0_i32 = arith.constant 0 : i32
    %c0_i32_0 = arith.constant 0 : i32
    %c0_i32_1 = arith.constant 0 : i32
    return %c0_i32, %c0_i32_0 : i32, i32
  }
  func.func @transform_2(%arg0: i32) -> (i32, i32) {
    %c0_i32 = arith.constant 0 : i32
    %c0_i32_0 = arith.constant 0 : i32
    %c0_i32_1 = arith.constant 0 : i32
    return %c0_i32, %c0_i32_0 : i32, i32
  }
  func.func @transform_3(%arg0: i32) -> (i32, i32) {
    %c0_i32 = arith.constant 0 : i32
    %c0_i32_0 = arith.constant 0 : i32
    return %c0_i32, %arg0 : i32, i32
  }
}

module attributes {stable_mosaic.version = 11 : i64} {
  func.func @_fc_stack_kernel(%arg0: i32, %arg1: memref<8x192xbf16, #tpu.memory_space<vmem>>, %arg2: memref<192x120xbf16, #tpu.memory_space<vmem>>, %arg3: memref<1x120xf32, #tpu.memory_space<vmem>>, %arg4: memref<120x64xf32, #tpu.memory_space<vmem>>, %arg5: memref<1x64xf32, #tpu.memory_space<vmem>>, %arg6: memref<64x10xf32, #tpu.memory_space<vmem>>, %arg7: memref<1x10xf32, #tpu.memory_space<vmem>>, %arg8: memref<8x10xf32, #tpu.memory_space<vmem>>) attributes {dimension_semantics = [#tpu.dimension_semantics<parallel>], iteration_bounds = array<i64: 1>, scalar_prefetch = 0 : i64, scratch_operands = 0 : i64, tpu.core_type = #tpu.core_type<tc>, window_params = [{transform_indices = @transform_0, window_bounds = array<i64: 8, 192>}, {pipeline_mode = #tpu.pipeline_mode<synchronous>, transform_indices = @transform_1, window_bounds = array<i64: 192, 120>}, {pipeline_mode = #tpu.pipeline_mode<synchronous>, transform_indices = @transform_2, window_bounds = array<i64: 1, 120>}, {pipeline_mode = #tpu.pipeline_mode<synchronous>, transform_indices = @transform_3, window_bounds = array<i64: 120, 64>}, {pipeline_mode = #tpu.pipeline_mode<synchronous>, transform_indices = @transform_4, window_bounds = array<i64: 1, 64>}, {pipeline_mode = #tpu.pipeline_mode<synchronous>, transform_indices = @transform_5, window_bounds = array<i64: 64, 10>}, {pipeline_mode = #tpu.pipeline_mode<synchronous>, transform_indices = @transform_6, window_bounds = array<i64: 1, 10>}, {transform_indices = @transform_7, window_bounds = array<i64: 8, 10>}]} {
    %c0 = arith.constant 0 : index
    %c0_0 = arith.constant 0 : index
    %0 = vector.load %arg1[%c0, %c0_0] : memref<8x192xbf16, #tpu.memory_space<vmem>>, vector<8x192xbf16>
    %c0_1 = arith.constant 0 : index
    %c0_2 = arith.constant 0 : index
    %1 = vector.load %arg2[%c0_1, %c0_2] : memref<192x120xbf16, #tpu.memory_space<vmem>>, vector<192x120xbf16>
    %cst = arith.constant dense<0.000000e+00> : vector<8x120xf32>
    %2 = tpu.matmul %0, %1, %cst {dimension_numbers = #tpu.dot_dimension_numbers<[1], [0], [0], [1], [0, 0, 1, 1], [], []>} : vector<8x192xbf16>, vector<192x120xbf16>, vector<8x120xf32> -> vector<8x120xf32>
    %c0_3 = arith.constant 0 : index
    %c0_4 = arith.constant 0 : index
    %3 = vector.load %arg3[%c0_3, %c0_4] : memref<1x120xf32, #tpu.memory_space<vmem>>, vector<1x120xf32>
    %4 = vector.broadcast %3 : vector<1x120xf32> to vector<8x120xf32>
    %5 = arith.addf %2, %4 : vector<8x120xf32>
    %cst_5 = arith.constant 0.000000e+00 : f32
    %6 = vector.broadcast %cst_5 : f32 to vector<8x120xf32>
    %7 = arith.maximumf %5, %6 : vector<8x120xf32>
    %c0_6 = arith.constant 0 : index
    %c0_7 = arith.constant 0 : index
    %8 = vector.load %arg4[%c0_6, %c0_7] : memref<120x64xf32, #tpu.memory_space<vmem>>, vector<120x64xf32>
    %cst_8 = arith.constant dense<0.000000e+00> : vector<8x64xf32>
    %9 = tpu.matmul %7, %8, %cst_8 {dimension_numbers = #tpu.dot_dimension_numbers<[1], [0], [0], [1], [0, 0, 1, 1], [], []>} : vector<8x120xf32>, vector<120x64xf32>, vector<8x64xf32> -> vector<8x64xf32>
    %c0_9 = arith.constant 0 : index
    %c0_10 = arith.constant 0 : index
    %10 = vector.load %arg5[%c0_9, %c0_10] : memref<1x64xf32, #tpu.memory_space<vmem>>, vector<1x64xf32>
    %11 = vector.broadcast %10 : vector<1x64xf32> to vector<8x64xf32>
    %12 = arith.addf %9, %11 : vector<8x64xf32>
    %cst_11 = arith.constant 0.000000e+00 : f32
    %13 = vector.broadcast %cst_11 : f32 to vector<8x64xf32>
    %14 = arith.maximumf %12, %13 : vector<8x64xf32>
    %c0_12 = arith.constant 0 : index
    %c0_13 = arith.constant 0 : index
    %15 = vector.load %arg6[%c0_12, %c0_13] : memref<64x10xf32, #tpu.memory_space<vmem>>, vector<64x10xf32>
    %cst_14 = arith.constant dense<0.000000e+00> : vector<8x10xf32>
    %16 = tpu.matmul %14, %15, %cst_14 {dimension_numbers = #tpu.dot_dimension_numbers<[1], [0], [0], [1], [0, 0, 1, 1], [], []>} : vector<8x64xf32>, vector<64x10xf32>, vector<8x10xf32> -> vector<8x10xf32>
    %c0_15 = arith.constant 0 : index
    %c0_16 = arith.constant 0 : index
    %17 = vector.load %arg7[%c0_15, %c0_16] : memref<1x10xf32, #tpu.memory_space<vmem>>, vector<1x10xf32>
    %18 = vector.broadcast %17 : vector<1x10xf32> to vector<8x10xf32>
    %19 = arith.addf %16, %18 : vector<8x10xf32>
    %cst_17 = arith.constant dense<0xFF800000> : vector<8xf32>
    %20 = vector.multi_reduction <maximumf>, %19, %cst_17 [1] : vector<8x10xf32> to vector<8xf32>
    %21 = vector.shape_cast %20 : vector<8xf32> to vector<8x1xf32>
    %22 = vector.broadcast %21 : vector<8x1xf32> to vector<8x10xf32>
    %23 = arith.subf %19, %22 : vector<8x10xf32>
    %24 = math.exp %23 : vector<8x10xf32>
    %cst_18 = arith.constant dense<0.000000e+00> : vector<8xf32>
    %25 = vector.multi_reduction <add>, %24, %cst_18 [1] : vector<8x10xf32> to vector<8xf32>
    %26 = vector.shape_cast %25 : vector<8xf32> to vector<8x1xf32>
    %27 = tpu.reciprocal %26 : vector<8x1xf32> -> vector<8x1xf32>
    %28 = vector.broadcast %27 : vector<8x1xf32> to vector<8x10xf32>
    %29 = arith.mulf %24, %28 : vector<8x10xf32>
    %c0_19 = arith.constant 0 : index
    %c0_20 = arith.constant 0 : index
    %30 = vector.load %arg8[%c0_19, %c0_20] : memref<8x10xf32, #tpu.memory_space<vmem>>, vector<8x10xf32>
    tpu.vector_store %arg8[%c0_19, %c0_20], %29 {strides = array<i32>} : memref<8x10xf32, #tpu.memory_space<vmem>>, vector<8x10xf32>,
    return
  }
  func.func @transform_0(%arg0: i32) -> (i32, i32) {
    %c0_i32 = arith.constant 0 : i32
    %c0_i32_0 = arith.constant 0 : i32
    return %arg0, %c0_i32 : i32, i32
  }
  func.func @transform_1(%arg0: i32) -> (i32, i32) {
    %c0_i32 = arith.constant 0 : i32
    %c0_i32_0 = arith.constant 0 : i32
    %c0_i32_1 = arith.constant 0 : i32
    return %c0_i32, %c0_i32_0 : i32, i32
  }
  func.func @transform_2(%arg0: i32) -> (i32, i32) {
    %c0_i32 = arith.constant 0 : i32
    %c0_i32_0 = arith.constant 0 : i32
    %c0_i32_1 = arith.constant 0 : i32
    return %c0_i32, %c0_i32_0 : i32, i32
  }
  func.func @transform_3(%arg0: i32) -> (i32, i32) {
    %c0_i32 = arith.constant 0 : i32
    %c0_i32_0 = arith.constant 0 : i32
    %c0_i32_1 = arith.constant 0 : i32
    return %c0_i32, %c0_i32_0 : i32, i32
  }
  func.func @transform_4(%arg0: i32) -> (i32, i32) {
    %c0_i32 = arith.constant 0 : i32
    %c0_i32_0 = arith.constant 0 : i32
    %c0_i32_1 = arith.constant 0 : i32
    return %c0_i32, %c0_i32_0 : i32, i32
  }
  func.func @transform_5(%arg0: i32) -> (i32, i32) {
    %c0_i32 = arith.constant 0 : i32
    %c0_i32_0 = arith.constant 0 : i32
    %c0_i32_1 = arith.constant 0 : i32
    return %c0_i32, %c0_i32_0 : i32, i32
  }
  func.func @transform_6(%arg0: i32) -> (i32, i32) {
    %c0_i32 = arith.constant 0 : i32
    %c0_i32_0 = arith.constant 0 : i32
    %c0_i32_1 = arith.constant 0 : i32
    return %c0_i32, %c0_i32_0 : i32, i32
  }
  func.func @transform_7(%arg0: i32) -> (i32, i32) {
    %c0_i32 = arith.constant 0 : i32
    %c0_i32_0 = arith.constant 0 : i32
    return %arg0, %c0_i32 : i32, i32
  }
}

</mosaic_0001>

<bundles_post_ra>
// kernel: net_forward.3
= control target key start
LH: loop header
LB: loop body
LE: loop exit
PB: predicated region body
PF: predicated region fallthrough
CT: control target
= control target key end

     0   :  { %s710_s12 = smov 0   ;;  %s712_s13 = smov 0   ;;  %s814_s0 = inlined_call_operand.vmem [shape: bf16[25,2048], index: 0, kind: input, shape index: {}]   ;;  %s815_s1 = inlined_call_operand.vmem [shape: bf16[4,25], index: 1, kind: input, shape index: {}]   ;;  %s816_s2 = inlined_call_operand.vmem [shape: f32[4,1], index: 2, kind: input, shape index: {}]   ;;  %s817_s3 = inlined_call_operand.vmem [shape: bf16[4,512], index: 3, kind: output, shape index: {}]  }
   0x1   :  { %s714_s14 = smov 0  }
   0x2 LB: > { %s601_s15 = sadd.s32 4294967295, %s686_s14   ;;  %s727_s16 = sadd.s32 1, %s686_s14   ;;  %s686_s14 = sphi %s714_s14, %s820_s14   ;;  %s682_s13 = sphi %s712_s13, %s819_s13   ;;  %s678_s12 = sphi %s710_s12, %s818_s12  }
   0x3   : > { %s17_s17 = ssub.s32 %s686_s14, %s727_s16  ;;  %s20_s18 = sadd.s32 1, %s682_s13 }
   0x4   : > { %p18_p0 = scmp.eq.s32.totalorder %s17_s17, 0  ;;  %p27_p1 = scmp.ne.s32.totalorder %s682_s13, %s678_s12 }
   0x5   : > { %p28_p2 = scmp.eq.s32.totalorder %s686_s14, 0  ;;  %p604_p4 = scmp.ge.s32.totalorder %s686_s14, 2 }
   0x6   : > { %s736_s19 = scalar_select %p18_p0, %s682_s13, %s20_s18  }
   0x7   : > { %p29_p3 = por %p28_p2, %p27_p1  ;;  %127 = sbr.rel (%p604_p4) target bundleno = 26 (0x1a), region = 24 }
   0xe   : > { %130 = sbr.rel (!%p29_p3) target bundleno = 26 (0x1a), region = 28  ;;  %s132_s20 = sand.u32 (%p29_p3), 1, %s682_s13  }
   0xf   : > { %s636_s21 = sshll.u32 (%p29_p3), %s686_s14, 5  ;;  %s605_s22 = sshll.u32 (%p29_p3), %s132_s20, 7 }
  0x10   : > { %s744_s25 = scalar_lea.vmem (%p29_p3), %s814_s0, %s636_s21  ;;  %s134_s26 = scalar_lea.vmem (%p29_p3), [#allocation2], %s605_s22 }
  0x11   : > { %v150_v0 = vld [vmem:[%s744_s25] sm:$0xff] (%p29_p3)  ;;  %v152_v1 = vld [vmem:[%s744_s25 + $0x8] sm:$0xff] (%p29_p3)  ;;  %v154_v2 = vld [vmem:[%s744_s25 + $0x10] sm:$0xff] (%p29_p3) }
  0x12   : > { %151 = vst [vmem:[%s134_s26] sm:$0xff] (%p29_p3), %v150_v0  ;;  %153 = vst [vmem:[%s134_s26 + $0x8] sm:$0xff] (%p29_p3), %v152_v1  ;;  %v156_v3 = vld [vmem:[%s744_s25 + $0x18] sm:$0xff] (%p29_p3)  ;;  %v158_v4 = vld [vmem:[%s744_s25 + $0x40] sm:$0xff] (%p29_p3) }
  0x13   : > { %155 = vst [vmem:[%s134_s26 + $0x10] sm:$0xff] (%p29_p3), %v154_v2  ;;  %v160_v5 = vld [vmem:[%s744_s25 + $0x48] sm:$0xff] (%p29_p3)  ;;  %157 = vst [vmem:[%s134_s26 + $0x18] sm:$0xff] (%p29_p3), %v156_v3  ;;  %v162_v6 = vld [vmem:[%s744_s25 + $0x50] sm:$0xff] (%p29_p3) }
  0x14   : > { %159 = vst [vmem:[%s134_s26 + $0x20] sm:$0xff] (%p29_p3), %v158_v4  ;;  %161 = vst [vmem:[%s134_s26 + $0x28] sm:$0xff] (%p29_p3), %v160_v5  ;;  %v164_v7 = vld [vmem:[%s744_s25 + $0x58] sm:$0xff] (%p29_p3)  ;;  %v166_v8 = vld [vmem:[%s744_s25 + $0x80] sm:$0xff] (%p29_p3) }
  0x15   : > { %163 = vst [vmem:[%s134_s26 + $0x30] sm:$0xff] %v162_v6  ;;  %165 = vst [vmem:[%s134_s26 + $0x38] sm:$0xff] %v164_v7  ;;  %v168_v9 = vld [vmem:[%s744_s25 + $0x88] sm:$0xff]  ;;  %v170_v10 = vld [vmem:[%s744_s25 + $0x90] sm:$0xff] }
  0x16   : > { %167 = vst [vmem:[%s134_s26 + $0x40] sm:$0xff] %v166_v8  ;;  %v172_v11 = vld [vmem:[%s744_s25 + $0x98] sm:$0xff]  ;;  %169 = vst [vmem:[%s134_s26 + $0x48] sm:$0xff] %v168_v9  ;;  %v174_v12 = vld [vmem:[%s744_s25 + $0xc0] sm:$0xff] }
  0x17   : > { %171 = vst [vmem:[%s134_s26 + $0x50] sm:$0xff] %v170_v10  ;;  %173 = vst [vmem:[%s134_s26 + $0x58] sm:$0xff] %v172_v11  ;;  %v176_v13 = vld [vmem:[%s744_s25 + $0xc8] sm:$0xff]  ;;  %v178_v14 = vld [vmem:[%s744_s25 + $0xd0] sm:$0xff] }
  0x18   : > { %175 = vst [vmem:[%s134_s26 + $0x60] sm:$0xff] %v174_v12  ;;  %177 = vst [vmem:[%s134_s26 + $0x68] sm:$0xff] %v176_v13  ;;  %v180_v15 = vld [vmem:[%s744_s25 + $0xd8] sm:$0xff] }
  0x19   : > { %179 = vst [vmem:[%s134_s26 + $0x70] sm:$0xff] %v178_v14  ;;  %181 = vst [vmem:[%s134_s26 + $0x78] sm:$0xff] %v180_v15 }
  0x1a PF: > { %p608_p5 = scmp.ge.s32.totalorder %s686_s14, 1  ;;  %p186_p6 = scmp.lt.s32.totalorder %s686_s14, 3 }
  0x1c   : > { %p187_p7 = pnand %p608_p5, %p186_p6 }
  0x1d   : > { %s193_s27 = sand.u32 (!%p187_p7), 1, %s678_s12   ;;  %vm317_vm0 = vcmask (!%p187_p7), 1043456   ;;  %vm318_vm1 = vcmask (!%p187_p7), 1044480   ;;  %v688_v16 = vmov (!%p187_p7), 65535   ;;  %v689_v18 = vmov (!%p187_p7), 0   ;;  %s610_s7 = sshll.u32 (!%p187_p7), %s601_s15, 1 }
  0x1e   : > { %190 = sbr.rel (%p187_p7) target bundleno = 277 (0x115), region = 51  ;;  %s609_s28 = sshll.u32 (!%p187_p7), %s193_s27, 7  ;;  %v319_v17 = vsel (!%p187_p7), %vm317_vm0, 4294967295, %v688_v16  ;;  %377 = vmatprep.mubr.bf16.mxu0 (!%p187_p7), %v689_v18  ;;  %418 = vmatprep.mubr.bf16.mxu1 (!%p187_p7), %v689_v18  ;;  %v515_v19 = vld [vmem:[%s816_s2] sm:$0xf] (!%p187_p7)  ;;  %vm313_vm2 = vcmask (!%p187_p7), 203776  }
  0x1f   : > { %663 = vset.pattern.permute.xlu0 (!%p187_p7), %v689_v18  ;;  %s771_s4 = scalar_lea.vmem (!%p187_p7), [#allocation2], %s609_s28  ;;  %v320_v28 = vsel (!%p187_p7), %vm318_vm1, %v319_v17, 0  ;;  %v224_v53 = vld [vmem:[%s815_s1] sm:$0x3] (!%p187_p7)  ;;  %p218_p8 = scmp.lt.s32.totalorder (!%p187_p7), %s610_s7, 3 }
  0x20   : > { %v225_v20 = vld [vmem:[%s771_s4] sm:$0xff] (!%p187_p7)  ;;  %v226_v22 = vld [vmem:[%s771_s4 + $0x8] sm:$0xff] (!%p187_p7)  ;;  %518 = vperm.xlu0 (!%p187_p7), %663, %v515_v19   ;;  %v227_v35 = vld [vmem:[%s771_s4 + $0x10] sm:$0xff] (!%p187_p7) }
  0x21   : > { %v229_v21 = vld [vmem:[%s771_s4 + $0x20] sm:$0xff] (!%p187_p7)  ;;  %v230_v24 = vld [vmem:[%s771_s4 + $0x28] sm:$0xff] (!%p187_p7)  ;;  %v231_v38 = vld [vmem:[%s771_s4 + $0x30] sm:$0xff] (!%p187_p7) }
  0x22   : > { %v613_v23 = vcombine.high (!%p187_p7), %v225_v20, %v229_v21  ;;  %v612_v25 = vcombine.low (!%p187_p7), %v225_v20, %v229_v21  ;;  %v233_v26 = vld [vmem:[%s771_s4 + $0x40] sm:$0xff] (!%p187_p7)  ;;  %v615_v29 = vcombine.high (!%p187_p7), %v226_v22, %v230_v24  ;;  %v614_v30 = vcombine.low (!%p187_p7), %v226_v22, %v230_v24  ;;  %v234_v32 = vld [vmem:[%s771_s4 + $0x48] sm:$0xff] (!%p187_p7)  ;;  %v228_v39 = vld [vmem:[%s771_s4 + $0x18] sm:$0xff] (!%p187_p7) }
  0x23   : > { %v237_v27 = vld [vmem:[%s771_s4 + $0x60] sm:$0x11] (!%p187_p7)  ;;  %v238_v33 = vld [vmem:[%s771_s4 + $0x68] sm:$0x11] (!%p187_p7)  ;;  %v232_v40 = vld [vmem:[%s771_s4 + $0x38] sm:$0xff] (!%p187_p7)  ;;  %v617_v48 = vcombine.high (!%p187_p7), %v227_v35, %v231_v38  ;;  %v616_v54 = vcombine.low (!%p187_p7), %v227_v35, %v231_v38 }
  0x24   : > { %v621_v31 = vcombine.high (!%p187_p7), %v233_v26, %v237_v27  ;;  %v620_v34 = vcombine.low (!%p187_p7), %v233_v26, %v237_v27  ;;  %345 = vmatprep.subr.bf16.mxu0 (!%p187_p7), %v613_v23  ;;  %v623_v36 = vcombine.high (!%p187_p7), %v234_v32, %v238_v33  ;;  %v622_v37 = vcombine.low (!%p187_p7), %v234_v32, %v238_v33  ;;  %v235_v43 = vld [vmem:[%s771_s4 + $0x50] sm:$0xff] (!%p187_p7)  ;;  %v236_v45 = vld [vmem:[%s771_s4 + $0x58] sm:$0xff] (!%p187_p7) }
  0x25   : > { %386 = vmatprep.subr.bf16.mxu1 %v615_v29  ;;  %346 = vmatpush1.bf16.msra.mxu0 %v612_v25  ;;  %v239_v44 = vld [vmem:[%s771_s4 + $0x70] sm:$0x11]  ;;  %v240_v49 = vld [vmem:[%s771_s4 + $0x78] sm:$0x11]  ;;  %v619_v50 = vcombine.high %v228_v39, %v232_v40  ;;  %v618_v56 = vcombine.low %v228_v39, %v232_v40  ;;  %s822_s7 = smov (!%p218_p8, %s610_s7), 3 }
  0x26   : > { %v325_v41 = vand.u32 %v621_v31, %v320_v28  ;;  %v322_v42 = vand.u32 %v620_v34, %v320_v28  ;;  %387 = vmatpush1.bf16.msra.mxu1 %v614_v30  ;;  %v331_v46 = vand.u32 %v623_v36, %v320_v28  ;;  %v328_v47 = vand.u32 %v622_v37, %v320_v28  ;;  %s611_s8 = sshll.u32 %s822_s7, 1 }
  0x27   : > { %v625_v51 = vcombine.high %v235_v43, %v239_v44  ;;  %v627_v52 = vcombine.high %v236_v45, %v240_v49  ;;  %v624_v55 = vcombine.low %v235_v43, %v239_v44  ;;  %v626_v58 = vcombine.low %v236_v45, %v240_v49  ;;  %s221_s11 = scalar_lea.vmem %s817_s3, %s611_s8 }
  0x28   : > { %347 = vmatprep.subr.bf16.mxu0 %v325_v41  ;;  %388 = vmatprep.subr.bf16.mxu1 %v331_v46 }
  0x29   : > { %348 = vmatpush1.bf16.msra.mxu0 %v322_v42  ;;  %v337_v57 = vand.u32 %v625_v51, %v320_v28  ;;  %v343_v59 = vand.u32 %v627_v52, %v320_v28  ;;  %v334_v60 = vand.u32 %v624_v55, %v320_v28  ;;  %v340_v61 = vand.u32 %v626_v58, %v320_v28 }
  0x2a   : > { %389 = vmatpush1.bf16.msra.mxu1 %v328_v47  ;;  %427 = vmatprep.subr.bf16.mxu0 %v617_v48 }
  0x2b   : > { %468 = vmatprep.subr.bf16.mxu1 %v619_v50 }
  0x2c   : > { %628 = vmatmul.mubr.msk.bf16.vlgmr.msra.gmra.mrb[0].mxu0 %vm313_vm2, %v224_v53 }
  0x2d   : > { %629 = vmatmul.mubr.msk.bf16.vlgmr.msra.gmra.mrb[0].mxu1 %vm313_vm2, %v224_v53  ;;  %428 = vmatpush1.bf16.msra.mxu0 %v616_v54 }
  0x2e   : > { %469 = vmatpush1.bf16.msra.mxu1 %v618_v56  ;;  %429 = vmatprep.subr.bf16.mxu0 %v337_v57 }
  0x2f   : > { %470 = vmatprep.subr.bf16.mxu1 %v343_v59  ;;  %459 = vmatprep.mubr.bf16.mxu0 %v689_v18 }
  0x30   : > { %500 = vmatprep.mubr.bf16.mxu1 %v689_v18 }
  0x31   : > { %430 = vmatpush1.bf16.msra.mxu0 %v334_v60 }
  0x32   : > { %471 = vmatpush1.bf16.msra.mxu1 %v340_v61 }
  0x34   : > { %630 = vmatmul.mubr.msk.bf16.vlgmr.msra.gmra.mrb[4].mxu0 %vm313_vm2, %v224_v53 }
  0x35   : > { %631 = vmatmul.mubr.msk.bf16.vlgmr.msra.gmra.mrb[4].mxu1 %vm313_vm2, %v224_v53 }
  0x9f   : > { %v519_v9 = vpop.permute.xlu0 %518 }
  0xff   : > { %v379_v62 = vpop.f32.mrb[0].mxu0 }
 0x100   : > { %v420_v63 = vpop.f32.mrb[0].mxu1  ;;  %v381_v0 = vpop.f32.mrb[1].mxu0 }
 0x101   : > { %v509_v1 = vmax.f32 %v379_v62, %v420_v63  ;;  %v422_v2 = vpop.f32.mrb[1].mxu1  ;;  %v383_v3 = vpop.f32.mrb[2].mxu0 }
 0x102   : > { %v510_v4 = vmax.f32 %v381_v0, %v422_v2  ;;  %v424_v5 = vpop.f32.mrb[2].mxu1  ;;  %v384_v6 = vpop.f32.mrb[3].mxu0 }
 0x103   : > { %v425_v7 = vpop.f32.mrb[3].mxu1 }
 0x107   : > { %v461_v8 = vpop.f32.mrb[4].mxu0 }
 0x108   : > { %v502_v10 = vpop.f32.mrb[4].mxu1  ;;  %v463_v11 = vpop.f32.mrb[5].mxu0 }
 0x109   : > { %v511_v12 = vmax.f32 %v461_v8, %v502_v10  ;;  %v504_v13 = vpop.f32.mrb[5].mxu1  ;;  %v465_v14 = vpop.f32.mrb[6].mxu0 }
 0x10a   : > { %v512_v15 = vmax.f32 %v463_v11, %v504_v13  ;;  %v506_v16 = vpop.f32.mrb[6].mxu1  ;;  %v466_v17 = vpop.f32.mrb[7].mxu0 }
 0x10b   : > { %v507_v18 = vpop.f32.mrb[7].mxu1  ;;  %v513_v19 = vmax.f32 %v509_v1, %v511_v12 }
 0x10c   : > { %v514_v20 = vmax.f32 %v510_v4, %v512_v15 }
 0x10d   : > { %v521_v21 = vadd.f32 %v519_v9, %v513_v19 }
 0x10e   : > { %v522_v22 = vadd.f32 %v519_v9, %v514_v20 }
 0x10f   : > { %v523_v23 = vmax.f32 %v521_v21, 0.0 }
 0x110   : > { %v524_v24 = vmax.f32 %v522_v22, 0.0 }
 0x112   : > { %v632_v25 = vpack.c.bf16 %v524_v24, %v523_v23 }
 0x114   : > { %633 = vst.sshfl [vmem:[%s221_s11] sm:$0x33 pattern:$0x76325410] %v632_v25 }
 0x115 PF: > { %p10_p9 = scmp.ge.s32.totalorder %s727_s16, 4   ;;  %s818_s12 = smov %s682_s13 }
 0x116   : > { %s819_s13 = smov %s736_s19  ;;  %s820_s14 = smov %s727_s16 }
 0x117   :  { %12 = sbr.rel (!%p10_p9) target bundleno = 2 (0x2), region = 90 }

// kernel: net_forward.4
= control target key start
LH: loop header
LB: loop body
LE: loop exit
PB: predicated region body
PF: predicated region fallthrough
CT: control target
= control target key end

     0   :  { %v397_v1 = vmov 0   ;;  %vm182_vm0 = vcmask 1041408   ;;  %vm178_vm1 = vcmask 818176   ;;  %s511_s0 = inlined_call_operand.vmem [shape: bf16[100,512], index: 0, kind: input, shape index: {}]   ;;  %s512_s2 = inlined_call_operand.vmem [shape: f32[12,1], index: 2, kind: input, shape index: {}]   ;;  %s513_s1 = inlined_call_operand.vmem [shape: bf16[12,100], index: 1, kind: input, shape index: {}]   ;;  %s514_s3 = inlined_call_operand.vmem [shape: bf16[12,128], index: 3, kind: output, shape index: {}]  }
   0x1   :  { %v356_v0 = vld [vmem:[%s511_s0 + $0x4] ss:$16 sps:$4 sm:$0xff]   ;;  %227 = vmatprep.mubr.bf16.mxu0 %v397_v1  ;;  %270 = vmatprep.mubr.bf16.mxu1 %v397_v1  ;;  %v358_v2 = vld [vmem:[%s511_s0 + $0xc] ss:$16 sps:$4 sm:$0xff]   ;;  %v360_v3 = vld [vmem:[%s511_s0] ss:$16 sps:$4 sm:$0xff]  }
   0x2   :  { %355 = vset.pattern.permute.xlu0 %v397_v1  ;;  %195 = vmatprep.subr.bf16.mxu0 %v356_v0  ;;  %v361_v4 = vld [vmem:[%s511_s0 + $0x8] ss:$16 sps:$4 sm:$0xff]   ;;  %v362_v5 = vld [vmem:[%s511_s0 + $0x24] ss:$16 sps:$4 sm:$0xff]   ;;  %v364_v6 = vld [vmem:[%s511_s0 + $0x2c] ss:$16 sps:$4 sm:$0xff]  }
   0x3   :  { %238 = vmatprep.subr.bf16.mxu1 %v358_v2  ;;  %196 = vmatpush1.bf16.msra.mxu0 %v360_v3  ;;  %v366_v7 = vld [vmem:[%s511_s0 + $0x20] ss:$16 sps:$4 sm:$0xff]   ;;  %v367_v8 = vld [vmem:[%s511_s0 + $0x28] ss:$16 sps:$4 sm:$0xff]   ;;  %v368_v9 = vld [vmem:[%s511_s0 + $0x44] ss:$16 sps:$4 sm:$0xff]  }
   0x4   :  { %239 = vmatpush1.bf16.msra.mxu1 %v361_v4  ;;  %197 = vmatprep.subr.bf16.mxu0 %v362_v5  ;;  %v370_v10 = vld [vmem:[%s511_s0 + $0x4c] ss:$16 sps:$4 sm:$0xff]   ;;  %v372_v11 = vld [vmem:[%s511_s0 + $0x40] ss:$16 sps:$4 sm:$0xff]   ;;  %v373_v12 = vld [vmem:[%s511_s0 + $0x48] ss:$16 sps:$4 sm:$0xff]  }
   0x5   :  { %240 = vmatprep.subr.bf16.mxu1 %v364_v6  ;;  %v374_v13 = vld [vmem:[%s511_s0 + $0x64] ss:$16 sps:$4 sm:$0xff]   ;;  %v376_v14 = vld [vmem:[%s511_s0 + $0x6c] ss:$16 sps:$4 sm:$0xff]   ;;  %v378_v15 = vld [vmem:[%s511_s0 + $0x60] ss:$16 sps:$4 sm:$0xff]  }
   0x6   :  { %v379_v16 = vld [vmem:[%s511_s0 + $0x68] ss:$16 sps:$4 sm:$0xff]   ;;  %v380_v17 = vld [vmem:[%s511_s0 + $0x84] ss:$16 sps:$4 sm:$0xff]   ;;  %v382_v18 = vld [vmem:[%s511_s0 + $0x8c] ss:$16 sps:$4 sm:$0xff]  }
   0x7   :  { %198 = vmatpush1.bf16.msra.mxu0 %v366_v7  ;;  %v384_v19 = vld [vmem:[%s511_s0 + $0x80] ss:$16 sps:$4 sm:$0xff]   ;;  %v385_v20 = vld [vmem:[%s511_s0 + $0x88] ss:$16 sps:$4 sm:$0xff]   ;;  %v386_v21 = vld [vmem:[%s511_s0 + $0xa4] ss:$16 sps:$4 sm:$0xff]  }
   0x8   :  { %241 = vmatpush1.bf16.msra.mxu1 %v367_v8  ;;  %199 = vmatprep.subr.bf16.mxu0 %v368_v9  ;;  %v388_v22 = vld [vmem:[%s511_s0 + $0xac] ss:$16 sps:$4 sm:$0xff]   ;;  %v41_v23 = vld [vmem:[%s511_s0 + $0xc0] sm:$0x33]  ;;  %v288_v26 = vld [vmem:[%s512_s2 + $0x8] sm:$0xf] }
   0x9   :  { %242 = vmatprep.subr.bf16.mxu1 %v370_v10  ;;  %v287_v24 = vld [vmem:[%s512_s2] sm:$0xff]  ;;  %v42_v25 = vld [vmem:[%s511_s0 + $0xc8] sm:$0x33]  ;;  %v343_v29 = vcombine.high %v41_v23, %v41_v23  ;;  %v342_v31 = vcombine.low %v41_v23, %v41_v23 }
   0xa   :  { %291 = vperm.xlu0 %355, %v287_v24   ;;  %v390_v27 = vld [vmem:[%s511_s0 + $0xa0] ss:$16 sps:$4 sm:$0xff]   ;;  %v391_v28 = vld [vmem:[%s511_s0 + $0xa8] ss:$16 sps:$4 sm:$0xff]   ;;  %v345_v30 = vcombine.high %v42_v25, %v42_v25  ;;  %v344_v32 = vcombine.low %v42_v25, %v42_v25 }
   0xb   :  { %200 = vmatpush1.bf16.msra.mxu0 %v372_v11  ;;  %v184_v33 = vsel %vm182_vm0, %v342_v31, 0  ;;  %v396_v35 = vld [vmem:[%s513_s1] sm:$0x3f]  }
   0xc   :  { %243 = vmatpush1.bf16.msra.mxu1 %v373_v12  ;;  %201 = vmatprep.subr.bf16.mxu0 %v374_v13  ;;  %v190_v34 = vsel %vm182_vm0, %v344_v32, 0 }
   0xd   :  { %244 = vmatprep.subr.bf16.mxu1 %v376_v14 }
   0xe   :  { %296 = vperm.xlu0 %355, %v288_v26  }
   0xf   :  { %202 = vmatpush1.bf16.msra.mxu0 %v378_v15 }
  0x10   :  { %245 = vmatpush1.bf16.msra.mxu1 %v379_v16  ;;  %203 = vmatprep.subr.bf16.mxu0 %v380_v17 }
  0x11   :  { %246 = vmatprep.subr.bf16.mxu1 %v382_v18 }
  0x13   :  { %204 = vmatpush1.bf16.msra.mxu0 %v384_v19 }
  0x14   :  { %247 = vmatpush1.bf16.msra.mxu1 %v385_v20  ;;  %205 = vmatprep.subr.bf16.mxu0 %v386_v21 }
  0x15   :  { %248 = vmatprep.subr.bf16.mxu1 %v388_v22 }
  0x17   :  { %206 = vmatpush1.bf16.msra.mxu0 %v390_v27 }
  0x18   :  { %249 = vmatpush1.bf16.msra.mxu1 %v391_v28  ;;  %346 = vmatprep.subr.msk.bf16.mxu0 %vm182_vm0, %v343_v29 }
  0x19   :  { %348 = vmatprep.subr.msk.bf16.mxu1 %vm182_vm0, %v345_v30 }
  0x1b   :  { %208 = vmatpush1.bf16.msra.mxu0 %v184_v33 }
  0x1c   :  { %251 = vmatpush1.bf16.msra.mxu1 %v190_v34 }
  0x1e   :  { %347 = vmatmul.mubr.msk.bf16.vlgmr.msra.gmra.mrb[0].mxu0 %vm178_vm1, %v396_v35 }
  0x1f   :  { %349 = vmatmul.mubr.msk.bf16.vlgmr.msra.gmra.mrb[0].mxu1 %vm178_vm1, %v396_v35 }
  0x89   :  { %v292_v36 = vpop.permute.xlu0 %291 }
  0x8d   :  { %v297_v52 = vpop.permute.xlu0 %296 }
  0xf1   :  { %v229_v37 = vpop.f32.mrb[0].mxu0 }
  0xf2   :  { %v272_v38 = vpop.f32.mrb[0].mxu1  ;;  %v231_v39 = vpop.f32.mrb[1].mxu0 }
  0xf3   :  { %v274_v40 = vpop.f32.mrb[1].mxu1  ;;  %v281_v41 = vmax.f32 %v229_v37, %v231_v39  ;;  %v233_v43 = vpop.f32.mrb[2].mxu0 }
  0xf4   :  { %v283_v42 = vmax.f32 %v272_v38, %v274_v40  ;;  %v276_v44 = vpop.f32.mrb[2].mxu1  ;;  %v235_v45 = vpop.f32.mrb[3].mxu0 }
  0xf5   :  { %v278_v46 = vpop.f32.mrb[3].mxu1  ;;  %v282_v48 = vmax.f32 %v233_v43, %v235_v45 }
  0xf6   :  { %v285_v47 = vmax.f32 %v281_v41, %v283_v42  ;;  %v284_v49 = vmax.f32 %v276_v44, %v278_v46 }
  0xf8   :  { %v299_v50 = vadd.f32 %v292_v36, %v285_v47  ;;  %v286_v51 = vmax.f32 %v282_v48, %v284_v49 }
  0xfa   :  { %v301_v53 = vmax.f32 %v299_v50, 0.0  ;;  %v300_v54 = vadd.f32 %v297_v52, %v286_v51 }
  0xfc   :  { %v352_v55 = vpack.c.bf16 %v301_v53, %v301_v53  ;;  %v302_v56 = vmax.f32 %v300_v54, 0.0 }
  0xfe   :  { %311 = vst [vmem:[%s514_s3] sm:$0xf] %v352_v55  ;;  %v353_v57 = vpack.c.bf16 %v302_v56, %v302_v56 }
 0x100   :  { %312 = vst [vmem:[%s514_s3 + $0x4] sm:$0x3] %v353_v57 }

// kernel: net_forward.5
= control target key start
LH: loop header
LB: loop body
LE: loop exit
PB: predicated region body
PF: predicated region fallthrough
CT: control target
= control target key end

     0   :  { %v536_v0 = vmov 0   ;;  %v537_v2 = vmov 0.0|0.0   ;;  %vm137_vm0 = vcmask 523264   ;;  %v538_v38 = vmov 0.0   ;;  %s730_s1 = inlined_call_operand.vmem [shape: bf16[192,120], index: 1, kind: input, shape index: {}]   ;;  %s731_s0 = inlined_call_operand.vmem [shape: bf16[8,192], index: 0, kind: input, shape index: {}]   ;;  %s732_s3 = inlined_call_operand.vmem [shape: f32[120,64], index: 3, kind: input, shape index: {}]   ;;  %s733_s2 = inlined_call_operand.vmem [shape: f32[1,120], index: 2, kind: input, shape index: {}]   ;;  %s734_s5 = inlined_call_operand.vmem [shape: f32[64,10], index: 5, kind: input, shape index: {}]   ;;  %s735_s4 = inlined_call_operand.vmem [shape: f32[1,64], index: 4, kind: input, shape index: {}]   ;;  %s736_s6 = inlined_call_operand.vmem [shape: f32[1,10], index: 6, kind: input, shape index: {}]   ;;  %s737_s7 = inlined_call_operand.vmem [shape: f32[8,10], index: 7, kind: output, shape index: {}]  }
   0x1   :  { %141 = vmatprep.subr.bf16.mxu0 %v536_v0  ;;  %v518_v1 = vld [vmem:[%s730_s1] sm:$0xff]   ;;  %481 = vmatprep.subr.bf16.mxu1 %v537_v2  ;;  %v519_v3 = vld [vmem:[%s730_s1 + $0x8] sm:$0xff]   ;;  %v520_v4 = vld [vmem:[%s730_s1 + $0x10] sm:$0xff]   ;;  %vm539_vm1 = vmmov 0   ;;  %vm204_vm2 = vcmask 982016   ;;  %vm367_vm3 = vcmask 80896  }
   0x2   :  { %142 = vmatpush1.bf16.msra.mxu0 %v518_v1  ;;  %v521_v5 = vld [vmem:[%s730_s1 + $0x18] sm:$0xff]   ;;  %v27_v6 = vld [vmem:[%s731_s0] sm:$0xff]  ;;  %v183_v8 = vld [vmem:[%s732_s3 + $0x8] sm:$0xff]  ;;  %459 = vmatprep.mubr.msk.f32.mxu1 %vm539_vm1, %v538_v38 }
   0x3   :  { %143 = vmatprep.subr.bf16.mxu0 %v536_v0  ;;  %v182_v7 = vld [vmem:[%s732_s3] sm:$0xff]  ;;  %v386_v9 = vcombine.high %v27_v6, %v27_v6  ;;  %v184_v11 = vld [vmem:[%s732_s3 + $0x10] sm:$0xff]  ;;  %v185_v12 = vld [vmem:[%s732_s3 + $0x18] sm:$0xff]  ;;  %v385_v34 = vcombine.low %v27_v6, %v27_v6 }
   0x4   :  { %v482_v10 = vpack.c.bf16 %v183_v8, %v182_v7  ;;  %v522_v13 = vld [vmem:[%s730_s1 + $0x20] sm:$0xff]   ;;  %v485_v14 = vpack.c.bf16 %v185_v12, %v184_v11  ;;  %v187_v16 = vld [vmem:[%s732_s3 + $0x28] sm:$0xff]  ;;  %v188_v19 = vld [vmem:[%s732_s3 + $0x30] sm:$0xff] }
   0x5   :  { %399 = vmatprep.mubr.msk.bf16.mxu0 %vm137_vm0, %v386_v9  ;;  %v186_v15 = vld [vmem:[%s732_s3 + $0x20] sm:$0xff]  ;;  %v523_v17 = vld [vmem:[%s730_s1 + $0x28] sm:$0xff]   ;;  %v189_v20 = vld [vmem:[%s732_s3 + $0x38] sm:$0xff] }
   0x6   :  { %144 = vmatpush1.bf16.msra.mxu0 %v519_v3  ;;  %483 = vmatpush3.bf16.msra.mxu1 %v482_v10  ;;  %v488_v18 = vpack.c.bf16 %v187_v16, %v186_v15  ;;  %v524_v21 = vld [vmem:[%s730_s1 + $0x30] sm:$0xff]   ;;  %v491_v22 = vpack.c.bf16 %v189_v20, %v188_v19  ;;  %v190_v23 = vld [vmem:[%s732_s3 + $0x40] sm:$0xff]  ;;  %v191_v24 = vld [vmem:[%s732_s3 + $0x48] sm:$0xff] }
   0x7   :  { %145 = vmatprep.subr.bf16.mxu0 %v536_v0  ;;  %484 = vmatprep.subr.bf16.mxu1 %v537_v2  ;;  %v525_v25 = vld [vmem:[%s730_s1 + $0x38] sm:$0xff]   ;;  %v494_v26 = vpack.c.bf16 %v191_v24, %v190_v23  ;;  %v192_v27 = vld [vmem:[%s732_s3 + $0x50] sm:$0xff]  ;;  %v526_v29 = vld [vmem:[%s730_s1 + $0x40] sm:$0xff]  }
   0x8   :  { %v193_v28 = vld [vmem:[%s732_s3 + $0x58] sm:$0xff]  ;;  %v527_v31 = vld [vmem:[%s730_s1 + $0x48] sm:$0xff]   ;;  %v528_v32 = vld [vmem:[%s730_s1 + $0x50] sm:$0xff]  }
   0x9   :  { %v497_v30 = vpack.c.bf16 %v193_v28, %v192_v27  ;;  %v529_v33 = vld [vmem:[%s730_s1 + $0x58] sm:$0xff]   ;;  %v194_v35 = vld [vmem:[%s732_s3 + $0x60] sm:$0xff]  ;;  %v195_v36 = vld [vmem:[%s732_s3 + $0x68] sm:$0xff] }
   0xa   :  { %146 = vmatpush1.bf16.msra.mxu0 %v520_v4  ;;  %486 = vmatpush3.bf16.msra.mxu1 %v485_v14  ;;  %v500_v37 = vpack.c.bf16 %v195_v36, %v194_v35  ;;  %v196_v39 = vld [vmem:[%s732_s3 + $0x70] sm:$0xff]  ;;  %v384_v40 = vld [vmem:[%s733_s2] ss:$0 sm:$0xff]  ;;  %v280_v42 = vld [vmem:[%s734_s5 + $0x8] sm:$0xff] }
   0xb   :  { %147 = vmatprep.subr.bf16.mxu0 %v536_v0  ;;  %487 = vmatprep.subr.bf16.mxu1 %v537_v2  ;;  %v279_v41 = vld [vmem:[%s734_s5] sm:$0xff]  ;;  %v281_v50 = vld [vmem:[%s734_s5 + $0x10] sm:$0xff]  ;;  %v282_v51 = vld [vmem:[%s734_s5 + $0x18] sm:$0xff] }
   0xc   :  { %v503_v47 = vpack.c.bf16 %v280_v42, %v279_v41  ;;  %v506_v52 = vpack.c.bf16 %v282_v51, %v281_v50  ;;  %v283_v53 = vld [vmem:[%s734_s5 + $0x20] sm:$0xff]  ;;  %v284_v54 = vld [vmem:[%s734_s5 + $0x28] sm:$0xff]  ;;  %v285_v56 = vld [vmem:[%s734_s5 + $0x30] sm:$0xff] }
   0xd   :  { %v509_v55 = vpack.c.bf16 %v284_v54, %v283_v53  ;;  %v286_v57 = vld [vmem:[%s734_s5 + $0x38] sm:$0xff]  ;;  %v400_v59 = vld [vmem:[%s735_s4] ss:$0 sm:$0xff] }
   0xe   :  { %148 = vmatpush1.bf16.msra.mxu0 %v521_v5  ;;  %489 = vmatpush3.bf16.msra.mxu1 %v488_v18  ;;  %v512_v58 = vpack.c.bf16 %v286_v57, %v285_v56 }
   0xf   :  { %149 = vmatprep.subr.bf16.mxu0 %v536_v0  ;;  %490 = vmatprep.subr.bf16.mxu1 %v537_v2 }
  0x12   :  { %150 = vmatpush1.bf16.msra.mxu0 %v522_v13  ;;  %492 = vmatpush3.bf16.msra.mxu1 %v491_v22 }
  0x13   :  { %151 = vmatprep.subr.bf16.mxu0 %v536_v0  ;;  %493 = vmatprep.subr.bf16.mxu1 %v537_v2 }
  0x16   :  { %152 = vmatpush1.bf16.msra.mxu0 %v523_v17  ;;  %495 = vmatpush3.bf16.msra.mxu1 %v494_v26 }
  0x17   :  { %153 = vmatprep.subr.bf16.mxu0 %v536_v0  ;;  %496 = vmatprep.subr.bf16.mxu1 %v537_v2 }
  0x1a   :  { %154 = vmatpush1.bf16.msra.mxu0 %v524_v21  ;;  %498 = vmatpush3.bf16.msra.mxu1 %v497_v30 }
  0x1b   :  { %155 = vmatprep.subr.bf16.mxu0 %v536_v0  ;;  %499 = vmatprep.subr.bf16.mxu1 %v537_v2 }
  0x1e   :  { %156 = vmatpush1.bf16.msra.mxu0 %v525_v25  ;;  %501 = vmatpush3.bf16.msra.mxu1 %v500_v37 }
  0x1f   :  { %157 = vmatprep.subr.bf16.mxu0 %v536_v0  ;;  %457 = vmatprep.subr.mxu1 %v538_v38 }
  0x22   :  { %158 = vmatpush1.bf16.msra.mxu0 %v526_v29  ;;  %458 = vmatpush3.msra.mxu1 %v196_v39 }
  0x23   :  { %159 = vmatprep.subr.bf16.mxu0 %v536_v0  ;;  %502 = vmatprep.subr.bf16.mxu1 %v537_v2 }
  0x26   :  { %160 = vmatpush1.bf16.msra.mxu0 %v527_v31 }
  0x27   :  { %161 = vmatprep.subr.bf16.mxu0 %v536_v0 }
  0x2a   :  { %162 = vmatpush1.bf16.msra.mxu0 %v528_v32 }
  0x2b   :  { %163 = vmatprep.subr.bf16.mxu0 %v536_v0  ;;  %v402_v0 = vld [vmem:[%s736_s6] ss:$0 sm:$0xff] }
  0x2e   :  { %164 = vmatpush1.bf16.msra.mxu0 %v529_v33 }
  0x31   :  { %174 = vmatmul.mubr.bf16.vlgmr.msra.gmra.mrb[0].mxu0 %v385_v34 }
 0x104   :  { %v175_v43 = vpop.f32.mrb[0].mxu0 }
 0x105   :  { %v176_v44 = vadd.f32 %v384_v40, %v175_v43  ;;  %v177_v45 = vpop.f32.mrb[1].mxu0 }
 0x106   :  { %v178_v46 = vpop.f32.mrb[2].mxu0 }
 0x107   :  { %v181_v48 = vmax.f32 %v176_v44, 0.0  ;;  %v179_v49 = vpop.f32.mrb[3].mxu0 }
 0x109   :  { %460 = vmatmul.mubr.msk.f32.vlgmr.msra.gmra.mrb[0].mxu1 %vm204_vm2, %v181_v48 }
 0x10a   :  { %504 = vmatpush3.bf16.msra.mxu1 %v503_v47  ;;  %478 = vmatprep.mubr.msk.f32.mxu1 %vm539_vm1, %v538_v38 }
 0x10b   :  { %505 = vmatprep.subr.bf16.mxu1 %v537_v2 }
 0x10e   :  { %507 = vmatpush3.bf16.msra.mxu1 %v506_v52 }
 0x10f   :  { %508 = vmatprep.subr.bf16.mxu1 %v537_v2 }
 0x112   :  { %510 = vmatpush3.bf16.msra.mxu1 %v509_v55 }
 0x113   :  { %511 = vmatprep.subr.bf16.mxu1 %v537_v2 }
 0x116   :  { %513 = vmatpush3.bf16.msra.mxu1 %v512_v58 }
 0x1dc   :  { %v274_v60 = vpop.f32.mrb[0].mxu1 }
 0x1dd   :  { %v275_v61 = vadd.f32 %v400_v59, %v274_v60  ;;  %v461_v62 = vpop.f32.mrb[1].mxu1 }
 0x1df   :  { %v278_v63 = vmax.f32 %v275_v61, 0.0 }
 0x1e1   :  { %479 = vmatmul.mubr.msk.f32.vlgmr.msra.gmra.mrb[2].mxu1 %vm137_vm0, %v278_v63 }
 0x2b4   :  { %v363_v1 = vpop.f32.mrb[2].mxu1 }
 0x2b5   :  { %v364_v2 = vadd.f32 %v402_v0, %v363_v1  ;;  %v480_v3 = vpop.f32.mrb[3].mxu1 }
 0x2b7   :  { %v368_v4 = vsel %vm367_vm3, %v364_v2, -inf }
 0x2b8   :  { %369 = vmax.xlane.f32.xlu0 %v368_v4 }
 0x345   :  { %v370_v5 = vpop.xlane.xlu0 %369 }
 0x346   :  { %v371_v6 = vsub.f32 %v364_v2, %v370_v5 }
 0x348   :  { %v372_v7 = vmul.f32 1.442695, %v371_v6 }
 0x34a   :  { %532 = vpow2.f32 %v372_v7 }
 0x354   :  { %v533_v8 = vpop.eup %532 }
 0x355   :  { %v374_v9 = vsel %vm367_vm3, %v533_v8, 0.0 }
 0x356   :  { %375 = vadd.xlane.f32.xlu0 %v374_v9 }
 0x3e3   :  { %v376_v10 = vpop.xlane.xlu0 %375 }
 0x3e4   :  { %534 = vrcp.f32 %v376_v10 }
 0x3ee   :  { %v535_v11 = vpop.eup %534 }
 0x3ef   :  { %v378_v12 = vmul.f32 %v535_v11, %v533_v8 }
 0x3f1   :  { %379 = vst.msk [vmem:[%s737_s7] sm:$0xff] %vm367_vm3, %v378_v12 }

</bundles_post_ra>
